<compile_context>
chip_gen: v5e
topology: v5e:2x2
jax: 0.10.0
libtpu: 0.0.40
codegen_flags: <defaults>
</compile_context>

<pallas_src>
import functools

import jax
import jax.numpy as jnp
from jax.experimental import pallas as pl
from jax.experimental.pallas import tpu as pltpu


def _qkv_fused_kernel(x_ref, w_ref, b_ref, q_ref, k_ref, v_ref):
    # Load the x row-tile once and reuse it for all three projections.
    x = x_ref[...]
    if x.dtype != w_ref.dtype:
        # Match MXU operand dtypes (e.g. bf16 weights with f32 activations); accumulate in f32.
        x = x.astype(w_ref.dtype)
    for h, o_ref in enumerate((q_ref, k_ref, v_ref)):
        acc = jnp.dot(x, w_ref[h], preferred_element_type=jnp.float32)  # (tm, tn) f32 on MXU
        acc = acc + b_ref[h].astype(jnp.float32)                        # bias in f32
        o_ref[...] = acc.astype(o_ref.dtype)


def fuse_qkv_params(w_q, b_q, w_k, b_k, w_v, b_v, param_dtype=None):
    """One-time (init-time) parameter prep.

    PyTorch nn.Linear stores W as (out, in) and computes y = x @ W.T + b.  We transpose once
    and stack the three projections into a (3, D, D) weight and a (3, 1, D) bias so the per-call
    hot path is three plain x @ W[h] matmuls with no per-call transpose or concat.
    `param_dtype=jnp.bfloat16` enables the bf16 MXU path (biases stay in their original dtype;
    they are added to the f32 accumulator anyway).
    """
    w_fused = jnp.stack([w_q.T, w_k.T, w_v.T], axis=0)          # (3, D, D)
    b_fused = jnp.stack([b_q, b_k, b_v], axis=0)[:, None, :]     # (3, 1, D)
    if param_dtype is not None:
        w_fused = w_fused.astype(param_dtype)
    return w_fused, b_fused


def _pick_tiles(M, D, x_item, w_item, out_item, budget, tm_hint):
    """Pick (tm, tn, weight_resident) so the full per-step VMEM footprint fits `budget`."""

    def footprint(tm, tn, w_bufs):
        x_b = 2 * tm * D * x_item                 # double-buffered x row tile
        w_b = w_bufs * 3 * D * tn * w_item        # weight tile (1 buf when resident)
        b_b = w_bufs * 3 * tn * max(w_item, 4)    # bias tile (tiny)
        o_b = 2 * 3 * tm * tn * out_item          # double-buffered Q/K/V output tiles
        acc_b = 3 * tm * tn * 4                   # f32 accumulator temporaries
        return x_b + w_b + b_b + o_b + acc_b

    # Row-tile candidates (largest first); a block equal to the full M has no alignment constraint.
    if M < 128:
        tm_candidates = [M]
    else:
        tm_candidates = []
        for t in (tm_hint, 512, 256, 128):
            if t <= M and t not in tm_candidates:
                tm_candidates.append(t)
        if not tm_candidates:
            tm_candidates = [M]

    # Column-tile candidates: full D first (weight resident, single-buffered), then 128-multiple
    # divisors of D (streamed, double-buffered).  Large tn minimizes x re-reads = ceil(D / tn).
    tn_candidates = [(D, 1)]
    if D % 128 == 0:
        for t in range(D - 128, 0, -128):
            if D % t == 0:
                tn_candidates.append((t, 2))

    for tn, w_bufs in tn_candidates:
        for tm in tm_candidates:
            if footprint(tm, tn, w_bufs) <= budget:
                return tm, tn, (w_bufs == 1)

    # Last resort: smallest candidates (let the compiler/vmem_limit sort it out).
    tn, w_bufs = tn_candidates[-1]
    return tm_candidates[-1], tn, (w_bufs == 1)


def qkv_generator(x, w_fused, b_fused, *, tm_hint=512):
    """x: (..., D); w_fused: (3, D, D) pre-fused/transposed; b_fused: (3, 1, D).

    Returns (Q, K, V), each with x's shape and dtype.
    """
    *lead, D = x.shape
    M = 1
    for s in lead:
        M *= s
    assert w_fused.shape == (3, D, D), w_fused.shape
    assert b_fused.shape == (3, 1, D), b_fused.shape

    x2 = x.reshape(M, D)

    x_item = jnp.dtype(x.dtype).itemsize
    w_item = jnp.dtype(w_fused.dtype).itemsize
    out_item = x_item

    # Generation-aware VMEM budget (v7x: 64 MiB physical -> ~40 MiB limit; v5e/v6e: 128 MiB
    # physical -> ~96 MiB limit).
    try:
        vmem_cap = int(pltpu.get_tpu_info().vmem_capacity_bytes)
    except Exception:
        vmem_cap = 64 * 1024 * 1024
    vmem_limit = int(vmem_cap * (0.625 if vmem_cap <= 64 * 1024 * 1024 else 0.75))

    tm, tn, weight_resident = _pick_tiles(
        M, D, x_item, w_item, out_item, int(vmem_limit * 0.85), tm_hint)

    n_col_tiles = pl.cdiv(D, tn)
    grid = (n_col_tiles, pl.cdiv(M, tm))  # weight-column axis outer, row axis inner

    # When the weight block index is constant over the whole grid, double-buffering it is pure
    # VMEM waste -> single buffer.  Only applied when the resident weight is big enough to matter.
    w_spec_kwargs = {}
    if weight_resident and 3 * D * D * w_item >= (4 << 20):
        w_spec_kwargs = dict(pipeline_mode=pl.Buffered(1))

    cost = pl.CostEstimate(
        flops=2 * M * D * 3 * D,
        transcendentals=0,
        bytes_accessed=(M * D * n_col_tiles) * x_item
        + 3 * D * D * w_item
        + 3 * D * 4
        + 3 * M * D * out_item,
    )

    out_struct = jax.ShapeDtypeStruct((M, D), x.dtype)
    out_block = pl.BlockSpec((tm, tn), lambda j, i: (i, j))

    # Note (megacore): the column axis is usually size 1 (resident weight), so the 2 TensorCores
    # on a v7x chip shard the row axis and only the (small, resident) weight is read per-core.
    q, k, v = pl.pallas_call(
        _qkv_fused_kernel,
        out_shape=(out_struct, out_struct, out_struct),
        grid_spec=pltpu.PrefetchScalarGridSpec(
            num_scalar_prefetch=0,
            grid=grid,
            in_specs=[
                pl.BlockSpec((tm, D), lambda j, i: (i, 0)),                     # x row tile
                pl.BlockSpec((3, D, tn), lambda j, i: (0, 0, j), **w_spec_kwargs),  # fused weight
                pl.BlockSpec((3, 1, tn), lambda j, i: (0, 0, j), **w_spec_kwargs),  # fused bias
            ],
            out_specs=(out_block, out_block, out_block),
        ),
        compiler_params=pltpu.CompilerParams(
            dimension_semantics=("parallel", "parallel"),
            vmem_limit_bytes=vmem_limit,
        ),
        cost_estimate=cost,
    )(x2, w_fused, b_fused)

    out_shape = tuple(lead) + (D,)
    return q.reshape(out_shape), k.reshape(out_shape), v.reshape(out_shape)


if __name__ == "__main__":
    B, S, D = 2, 8, 32  # batch, seq, d_model

    key = jax.random.PRNGKey(0)
    kx, kq, kbq, kk, kbk, kv, kbv = jax.random.split(key, 7)

    x = jax.random.normal(kx, (B, S, D), dtype=jnp.float32)

    # Deterministic parameter init (uniform, same bound as PyTorch nn.Linear default).
    bound = 1.0 / (D ** 0.5)
    w_q = jax.random.uniform(kq, (D, D), jnp.float32, -bound, bound)
    b_q = jax.random.uniform(kbq, (D,), jnp.float32, -bound, bound)
    w_k = jax.random.uniform(kk, (D, D), jnp.float32, -bound, bound)
    b_k = jax.random.uniform(kbk, (D,), jnp.float32, -bound, bound)
    w_v = jax.random.uniform(kv, (D, D), jnp.float32, -bound, bound)
    b_v = jax.random.uniform(kbv, (D,), jnp.float32, -bound, bound)

    # One-time fusion at "model init" time (kept out of the per-call hot path).
    # For the bf16 MXU fast path on real models use param_dtype=jnp.bfloat16 here.
    w_fused, b_fused = fuse_qkv_params(w_q, b_q, w_k, b_k, w_v, b_v)
    w_fused, b_fused = jax.block_until_ready((w_fused, b_fused))

    Q, K, V = qkv_generator(x, w_fused, b_fused)
    jax.block_until_ready((Q, K, V))

    # Pure-JAX reference check (y = x @ W.T + b, PyTorch Linear semantics).
    Q_ref = x @ w_q.T + b_q
    K_ref = x @ w_k.T + b_k
    V_ref = x @ w_v.T + b_v
    assert jnp.allclose(Q, Q_ref, atol=1e-5, rtol=1e-5)
    assert jnp.allclose(K, K_ref, atol=1e-5, rtol=1e-5)
    assert jnp.allclose(V, V_ref, atol=1e-5, rtol=1e-5)
    assert Q.shape == (B, S, D) and Q.dtype == x.dtype
    assert K.shape == (B, S, D) and V.shape == (B, S, D)

    print("KERNEL_OK")
</pallas_src>

<mosaic_0001>
module attributes {stable_mosaic.version = 11 : i64} {
  func.func @_qkv_fused_kernel(%arg0: i32, %arg1: i32, %arg2: memref<16x32xf32, #tpu.memory_space<vmem>>, %arg3: memref<3x32x32xf32, #tpu.memory_space<vmem>>, %arg4: memref<3x1x32xf32, #tpu.memory_space<vmem>>, %arg5: memref<16x32xf32, #tpu.memory_space<vmem>>, %arg6: memref<16x32xf32, #tpu.memory_space<vmem>>, %arg7: memref<16x32xf32, #tpu.memory_space<vmem>>) attributes {dimension_semantics = [#tpu.dimension_semantics<parallel>, #tpu.dimension_semantics<parallel>], iteration_bounds = array<i64: 1, 1>, scalar_prefetch = 0 : i64, scratch_operands = 0 : i64, tpu.core_type = #tpu.core_type<tc>, window_params = [{transform_indices = @transform_0, window_bounds = array<i64: 16, 32>}, {transform_indices = @transform_1, window_bounds = array<i64: 3, 32, 32>}, {transform_indices = @transform_2, window_bounds = array<i64: 3, 1, 32>}, {transform_indices = @transform_3, window_bounds = array<i64: 16, 32>}, {transform_indices = @transform_4, window_bounds = array<i64: 16, 32>}, {transform_indices = @transform_5, window_bounds = array<i64: 16, 32>}]} {
    %c0 = arith.constant 0 : index
    %c0_0 = arith.constant 0 : index
    %0 = vector.load %arg2[%c0, %c0_0] : memref<16x32xf32, #tpu.memory_space<vmem>>, vector<16x32xf32>
    %c0_1 = arith.constant 0 : index
    %c0_2 = arith.constant 0 : index
    %c0_3 = arith.constant 0 : index
    %1 = vector.load %arg3[%c0_1, %c0_2, %c0_3] : memref<3x32x32xf32, #tpu.memory_space<vmem>>, vector<1x32x32xf32>
    %2 = vector.shape_cast %1 : vector<1x32x32xf32> to vector<32x32xf32>
    %cst = arith.constant dense<0.000000e+00> : vector<16x32xf32>
    %3 = tpu.matmul %0, %2, %cst {dimension_numbers = #tpu.dot_dimension_numbers<[1], [0], [0], [1], [0, 0, 1, 1], [], []>} : vector<16x32xf32>, vector<32x32xf32>, vector<16x32xf32> -> vector<16x32xf32>
    %c0_4 = arith.constant 0 : index
    %c0_5 = arith.constant 0 : index
    %c0_6 = arith.constant 0 : index
    %4 = vector.load %arg4[%c0_4, %c0_5, %c0_6] : memref<3x1x32xf32, #tpu.memory_space<vmem>>, vector<1x1x32xf32>
    %5 = vector.shape_cast %4 : vector<1x1x32xf32> to vector<1x32xf32>
    %6 = vector.broadcast %5 : vector<1x32xf32> to vector<16x32xf32>
    %7 = arith.addf %3, %6 : vector<16x32xf32>
    %c0_7 = arith.constant 0 : index
    %c0_8 = arith.constant 0 : index
    %8 = vector.load %arg5[%c0_7, %c0_8] : memref<16x32xf32, #tpu.memory_space<vmem>>, vector<16x32xf32>
    tpu.vector_store %arg5[%c0_7, %c0_8], %7 {strides = array<i32>} : memref<16x32xf32, #tpu.memory_space<vmem>>, vector<16x32xf32>,
    %c1 = arith.constant 1 : index
    %c0_9 = arith.constant 0 : index
    %c0_10 = arith.constant 0 : index
    %9 = vector.load %arg3[%c1, %c0_9, %c0_10] : memref<3x32x32xf32, #tpu.memory_space<vmem>>, vector<1x32x32xf32>
    %10 = vector.shape_cast %9 : vector<1x32x32xf32> to vector<32x32xf32>
    %cst_11 = arith.constant dense<0.000000e+00> : vector<16x32xf32>
    %11 = tpu.matmul %0, %10, %cst_11 {dimension_numbers = #tpu.dot_dimension_numbers<[1], [0], [0], [1], [0, 0, 1, 1], [], []>} : vector<16x32xf32>, vector<32x32xf32>, vector<16x32xf32> -> vector<16x32xf32>
    %c1_12 = arith.constant 1 : index
    %c0_13 = arith.constant 0 : index
    %c0_14 = arith.constant 0 : index
    %12 = vector.load %arg4[%c1_12, %c0_13, %c0_14] : memref<3x1x32xf32, #tpu.memory_space<vmem>>, vector<1x1x32xf32>
    %13 = vector.shape_cast %12 : vector<1x1x32xf32> to vector<1x32xf32>
    %14 = vector.broadcast %13 : vector<1x32xf32> to vector<16x32xf32>
    %15 = arith.addf %11, %14 : vector<16x32xf32>
    %c0_15 = arith.constant 0 : index
    %c0_16 = arith.constant 0 : index
    %16 = vector.load %arg6[%c0_15, %c0_16] : memref<16x32xf32, #tpu.memory_space<vmem>>, vector<16x32xf32>
    tpu.vector_store %arg6[%c0_15, %c0_16], %15 {strides = array<i32>} : memref<16x32xf32, #tpu.memory_space<vmem>>, vector<16x32xf32>,
    %c2 = arith.constant 2 : index
    %c0_17 = arith.constant 0 : index
    %c0_18 = arith.constant 0 : index
    %17 = vector.load %arg3[%c2, %c0_17, %c0_18] : memref<3x32x32xf32, #tpu.memory_space<vmem>>, vector<1x32x32xf32>
    %18 = vector.shape_cast %17 : vector<1x32x32xf32> to vector<32x32xf32>
    %cst_19 = arith.constant dense<0.000000e+00> : vector<16x32xf32>
    %19 = tpu.matmul %0, %18, %cst_19 {dimension_numbers = #tpu.dot_dimension_numbers<[1], [0], [0], [1], [0, 0, 1, 1], [], []>} : vector<16x32xf32>, vector<32x32xf32>, vector<16x32xf32> -> vector<16x32xf32>
    %c2_20 = arith.constant 2 : index
    %c0_21 = arith.constant 0 : index
    %c0_22 = arith.constant 0 : index
    %20 = vector.load %arg4[%c2_20, %c0_21, %c0_22] : memref<3x1x32xf32, #tpu.memory_space<vmem>>, vector<1x1x32xf32>
    %21 = vector.shape_cast %20 : vector<1x1x32xf32> to vector<1x32xf32>
    %22 = vector.broadcast %21 : vector<1x32xf32> to vector<16x32xf32>
    %23 = arith.addf %19, %22 : vector<16x32xf32>
    %c0_23 = arith.constant 0 : index
    %c0_24 = arith.constant 0 : index
    %24 = vector.load %arg7[%c0_23, %c0_24] : memref<16x32xf32, #tpu.memory_space<vmem>>, vector<16x32xf32>
    tpu.vector_store %arg7[%c0_23, %c0_24], %23 {strides = array<i32>} : memref<16x32xf32, #tpu.memory_space<vmem>>, vector<16x32xf32>,
    return
  }
  func.func @transform_0(%arg0: i32, %arg1: i32) -> (i32, i32) {
    %c0_i32 = arith.constant 0 : i32
    %c0_i32_0 = arith.constant 0 : i32
    return %arg1, %c0_i32 : i32, i32
  }
  func.func @transform_1(%arg0: i32, %arg1: i32) -> (i32, i32, i32) {
    %c0_i32 = arith.constant 0 : i32
    %c0_i32_0 = arith.constant 0 : i32
    %c0_i32_1 = arith.constant 0 : i32
    return %c0_i32, %c0_i32_0, %arg0 : i32, i32, i32
  }
  func.func @transform_2(%arg0: i32, %arg1: i32) -> (i32, i32, i32) {
    %c0_i32 = arith.constant 0 : i32
    %c0_i32_0 = arith.constant 0 : i32
    %c0_i32_1 = arith.constant 0 : i32
    return %c0_i32, %c0_i32_0, %arg0 : i32, i32, i32
  }
  func.func @transform_3(%arg0: i32, %arg1: i32) -> (i32, i32) {
    %c0_i32 = arith.constant 0 : i32
    return %arg1, %arg0 : i32, i32
  }
  func.func @transform_4(%arg0: i32, %arg1: i32) -> (i32, i32) {
    %c0_i32 = arith.constant 0 : i32
    return %arg1, %arg0 : i32, i32
  }
  func.func @transform_5(%arg0: i32, %arg1: i32) -> (i32, i32) {
    %c0_i32 = arith.constant 0 : i32
    return %arg1, %arg0 : i32, i32
  }
}

</mosaic_0001>

<bundles_post_ra>
// kernel: tpu_custom_call.1
= control target key start
LH: loop header
LB: loop body
LE: loop exit
PB: predicated region body
PF: predicated region fallthrough
CT: control target
= control target key end

     0   :  { %11 = vsyncpa [#allocation3], 0  ;;  %s493_s0 = inlined_call_operand.hbm [shape: f32[16,32], index: 0, kind: input, shape index: {}]   ;;  %s494_s1 = inlined_call_operand.hbm [shape: f32[3,32,32], index: 1, kind: input, shape index: {}]   ;;  %s495_s2 = inlined_call_operand.hbm [shape: f32[3,1,32], index: 2, kind: input, shape index: {}]   ;;  %s496_s3 = inlined_call_operand.hbm [shape: f32[16,32], index: 3, kind: output, shape index: {0}]   ;;  %s497_s4 = inlined_call_operand.hbm [shape: f32[16,32], index: 4, kind: output, shape index: {1}]   ;;  %s498_s5 = inlined_call_operand.hbm [shape: f32[16,32], index: 5, kind: output, shape index: {2}]  }
   0x1   :  { %12 = vsyncpa [#allocation6], 0 }
   0x2   :  { %13 = vsyncpa [#allocation4], 0 }
   0x3   :  { %14 = vsyncpa [#allocation10], 0  ;;  %s32_s20 = sshll.u32 %s494_s1, 4  ;;  %s408_s21 = smov [#allocation5]   ;;  %s33_s20 = int_to_ptr.hbm [resolvable:$true] %s32_s20 }
   0x4   :  { %s34_s22 = sshll.u32 %s408_s21, 4  ;;  %s19_s25 = sshll.u32 %s493_s0, 4  ;;  %s35_s22 = int_to_ptr.vmem [resolvable:$true] %s34_s22  ;;  %s20_s25 = int_to_ptr.hbm [resolvable:$true] %s19_s25 }
   0x5   :  { %s409_s26 = smov 128   ;;  %s410_s27 = smov 8  }
   0x6   :  { %40 = dma.hbm_to_vmem [thread:$0]  %s33_s20, 1536, %s35_s22, [#allocation6], %s409_s26, %s409_s26, %s410_s27  }
   0x7   :  { %s411_s28 = smov [#allocation2]   ;;  %s45_s1 = sshll.u32 %s495_s2, 4  ;;  %s46_s1 = int_to_ptr.hbm [resolvable:$true] %s45_s1 }
   0x8   :  { %s21_s29 = sshll.u32 %s411_s28, 4  ;;  %s412_s0 = smov [#allocation7]   ;;  %s22_s29 = int_to_ptr.vmem [resolvable:$true] %s21_s29 }
   0x9   :  { %27 = dma.hbm_to_vmem [thread:$0]  %s20_s25, 256, %s22_s29, [#allocation3], %s409_s26, %s409_s26, %s410_s27  }
   0xa   :  { %s47_s7 = sshll.u32 %s412_s0, 4  ;;  %s413_s8 = smov 16   ;;  %s48_s7 = int_to_ptr.vmem [resolvable:$true] %s47_s7 }
   0xb   :  { %s414_s9 = smov 1  }
   0xc   :  { %53 = dma.hbm_to_vmem [thread:$0]  %s46_s1, 48, %s48_s7, [#allocation6], %s413_s8, %s413_s8, %s414_s9  }
   0xd   :  { %400 = dma.done.wait [#allocation3], 256  }
   0xe   :  { %401 = vsyncadd [#allocation3], 4294967040 }
   0xf   :  { %402 = dma.done.wait [#allocation6], 1584  }
  0x10   :  { %403 = vsyncadd [#allocation6], 4294965712  ;;  %v147_v0 = vld [vmem:[#allocation5 + $0x58] sm:$0xff]  ;;  %v146_v1 = vld [vmem:[#allocation5 + $0x50] sm:$0xff]  ;;  %vm76_vm0 = vcmask 261120   ;;  %s415_s2 = smov [#allocation8]  }
  0x11   :  { %165 = vmatpush.msra.mxu2 %v147_v0  ;;  %v112_v2 = vld [vmem:[#allocation5 + $0x38] sm:$0xff]  ;;  %v111_v3 = vld [vmem:[#allocation5 + $0x30] sm:$0xff]  ;;  %v145_v4 = vld [vmem:[#allocation5 + $0x48] sm:$0xff]  ;;  %s182_s10 = sshll.u32 %s415_s2, 4  ;;  %s184_s13 = sshll.u32 %s496_s3, 4  ;;  %s183_s10 = int_to_ptr.vmem [resolvable:$true] %s182_s10  ;;  %s185_s13 = int_to_ptr.hbm [resolvable:$true] %s184_s13 }
  0x12   :  { %130 = vmatpush.msra.mxu1 %v112_v2  ;;  %v71_v5 = vld [vmem:[#allocation5 + $0x18] sm:$0xff]  ;;  %v144_v6 = vld [vmem:[#allocation5 + $0x40] sm:$0xff]  ;;  %v110_v7 = vld [vmem:[#allocation5 + $0x28] sm:$0xff]  ;;  %s416_s14 = smov [#allocation9]   ;;  %s197_s18 = sshll.u32 %s497_s4, 4  ;;  %s198_s18 = int_to_ptr.hbm [resolvable:$true] %s197_s18 }
  0x13   :  { %166 = vmatpush.msra.mxu2 %v146_v1  ;;  %239 = vmatpush.msra.mxu3 %v71_v5  ;;  %v70_v8 = vld [vmem:[#allocation5 + $0x10] sm:$0xff]  ;;  %v69_v10 = vld [vmem:[#allocation5 + $0x8] sm:$0xff]  ;;  %v109_v11 = vld [vmem:[#allocation5 + $0x20] sm:$0xff]  ;;  %s195_s15 = sshll.u32 %s416_s14, 4  ;;  %s417_s3 = smov [#allocation11]   ;;  %s196_s15 = int_to_ptr.vmem [resolvable:$true] %s195_s15 }
  0x14   :  { %131 = vmatpush.msra.mxu1 %v111_v3  ;;  %v66_v9 = vld [vmem:[#allocation2] sm:$0xff]  ;;  %95 = vmatpush.msra.mxu0 %v71_v5  ;;  %v68_v12 = vld [vmem:[#allocation5] sm:$0xff]  ;;  %v67_v13 = vld [vmem:[#allocation2 + $0x8] sm:$0xff]  ;;  %s208_s19 = sshll.u32 %s417_s3, 4  ;;  %s210_s4 = sshll.u32 %s498_s5, 4  ;;  %s209_s19 = int_to_ptr.vmem [resolvable:$true] %s208_s19  ;;  %s211_s4 = int_to_ptr.hbm [resolvable:$true] %s210_s4 }
  0x15   :  { %167 = vmatpush.msra.mxu2 %v145_v4  ;;  %240 = vmatpush.msra.mxu3 %v70_v8  ;;  %v253_v14 = vld [vmem:[#allocation7 + $0x1] ss:$0 sm:$0xff]  ;;  %v255_v17 = vld [vmem:[#allocation7] ss:$0 sm:$0xff]  ;;  %v254_v18 = vld [vmem:[#allocation7 + $0x2] ss:$0 sm:$0xff] }
  0x16   :  { %132 = vmatpush.msra.mxu1 %v110_v7  ;;  %96 = vmatpush.msra.mxu0 %v70_v8 }
  0x17   :  { %168 = vmatpush.msra.mxu2 %v144_v6  ;;  %241 = vmatpush.msra.mxu3 %v69_v10 }
  0x18   :  { %237 = vmatmul.msk.f32.vlgmr.msra.gmra.mxu2 %vm76_vm0, %v66_v9  ;;  %133 = vmatpush.msra.mxu1 %v109_v11 }
  0x19   :  { %235 = vmatmul.msk.f32.vlgmr.msra.gmra.mxu1 %vm76_vm0, %v66_v9  ;;  %242 = vmatpush.msra.mxu3 %v68_v12 }
  0x1a   :  { %234 = vmatmul.msk.f32.vlgmr.msra.gmra.mxu3 %vm76_vm0, %v67_v13  ;;  %97 = vmatpush.msra.mxu0 %v69_v10 }
  0x1c   :  { %98 = vmatpush.msra.mxu0 %v68_v12 }
  0x1d   :  { %233 = vmatmul.msk.f32.vlgmr.msra.gmra.mxu0 %vm76_vm0, %v66_v9 }
  0x20   :  { %238 = vmatmul.msk.f32.gmra.mxu2 %vm76_vm0, %v67_v13 }
  0x21   :  { %236 = vmatmul.msk.f32.gmra.mxu1 %vm76_vm0, %v67_v13 }
  0x96   :  { %v135_v15 = vpop.f32.mrf.mxu1 }
  0x97   :  { %v136_v16 = vadd.f32 %v253_v14, %v135_v15 }
  0x99   :  { %141 = vst.msk [vmem:[#allocation9] sm:$0xff] %vm76_vm0, %v136_v16 }
  0x9a   :  { %v100_v19 = vpop.f32.mrf.mxu0 }
  0x9b   :  { %v170_v20 = vpop.f32.mrf.mxu2  ;;  %v101_v21 = vadd.f32 %v255_v17, %v100_v19 }
  0x9c   :  { %v171_v22 = vadd.f32 %v254_v18, %v170_v20 }
  0x9d   :  { %106 = vst.msk [vmem:[#allocation8] sm:$0xff] %vm76_vm0, %v101_v21  ;;  %v103_v23 = vpop.f32.mrf.mxu3 }
  0x9e   :  { %176 = vst.msk [vmem:[#allocation11] sm:$0xff] %vm76_vm0, %v171_v22  ;;  %v138_v24 = vpop.f32.mrf.mxu1  ;;  %v104_v25 = vadd.f32 %v255_v17, %v103_v23 }
  0x9f   :  { %v139_v26 = vadd.f32 %v253_v14, %v138_v24 }
  0xa0   :  { %107 = vst.msk [vmem:[#allocation8 + $0x8] sm:$0xff] %vm76_vm0, %v104_v25 }
  0xa1   :  { %142 = vst.msk [vmem:[#allocation9 + $0x8] sm:$0xff] %vm76_vm0, %v139_v26  ;;  %190 = dma.vmem_to_hbm [thread:$0]  %s183_s10, 256, %s185_s13, [#allocation4], %s409_s26, %s409_s26, %s410_s27  }
  0xa2   :  { %203 = dma.vmem_to_hbm [thread:$0]  %s196_s15, 256, %s198_s18, [#allocation10], %s409_s26, %s409_s26, %s410_s27  }
  0xa3   :  { %v173_v27 = vpop.f32.mrf.mxu2 }
  0xa4   :  { %v174_v28 = vadd.f32 %v254_v18, %v173_v27 }
  0xa6   :  { %177 = vst.msk [vmem:[#allocation11 + $0x8] sm:$0xff] %vm76_vm0, %v174_v28 }
  0xa7   :  { %216 = dma.vmem_to_hbm [thread:$0]  %s209_s19, 256, %s211_s4, [#allocation10], %s409_s26, %s409_s26, %s410_s27  }
  0xa8   :  { %404 = dma.done.wait [#allocation4], 256  }
  0xa9   :  { %405 = vsyncadd [#allocation4], 4294967040 }
  0xaa   :  { %406 = dma.done.wait [#allocation10], 512  }
  0xab   :  { %407 = vsyncadd [#allocation10], 4294966784 }
  0xac   :  { %229 = vsyncpa [#allocation3], 1 }
  0xad   :  { %230 = vsyncpa [#allocation6], 1 }
  0xae   :  { %231 = vsyncpa [#allocation4], 1 }
  0xaf   :  { %232 = vsyncpa [#allocation10], 1 }

</bundles_post_ra>
